<compile_context>
chip_gen: v6e
topology: v6e:2x2x1
jax: 0.10.0
libtpu: 0.0.40
codegen_flags: <defaults>
</compile_context>

<pallas_src>
import functools

import jax
import jax.numpy as jnp
from jax.experimental import pallas as pl
from jax.experimental.pallas import tpu as pltpu


def mlp_kernel(x_ref,
               w1_ref, b1_ref,
               w2_ref, b2_ref,
               w3_ref, b3_ref,
               w4_ref, b4_ref,
               w5r_ref, b5_ref,
               o_ref):
    cdt = w1_ref.dtype  # compute (MXU operand) dtype, e.g. bf16

    # Layer 1: Linear + ReLU (Dropout is identity in eval mode).
    h = jnp.dot(x_ref[...], w1_ref[...], preferred_element_type=jnp.float32)
    h = jnp.maximum(h + b1_ref[...], 0.0)                 # f32 elementwise
    # Layer 2
    h = jnp.dot(h.astype(cdt), w2_ref[...], preferred_element_type=jnp.float32)
    h = jnp.maximum(h + b2_ref[...], 0.0)
    # Layer 3
    h = jnp.dot(h.astype(cdt), w3_ref[...], preferred_element_type=jnp.float32)
    h = jnp.maximum(h + b3_ref[...], 0.0)
    # Layer 4
    h = jnp.dot(h.astype(cdt), w4_ref[...], preferred_element_type=jnp.float32)
    h = jnp.maximum(h + b4_ref[...], 0.0)
    # Output layer (h4 -> 1): VPU multiply + row-reduce instead of an N=1
    # matmul (which would occupy 1/256 of the MXU columns).
    w5_row = w5r_ref[...].astype(jnp.float32)             # (1, h4)
    o = jnp.sum(h * w5_row, axis=-1, keepdims=True) + b5_ref[...]
    o_ref[...] = o.astype(o_ref.dtype)
    # TODO(synk): training-mode Dropout would need pltpu.prng_seed /
    # prng_random_bits masking; omitted (inference semantics).


def _round_up(a, m):
    return ((a + m - 1) // m) * m


@functools.partial(jax.jit, static_argnames=("batch_tile", "compute_dtype",
                                             "vmem_limit_bytes"))
def simple_nn_forward(x, params, *, batch_tile=1024,
                      compute_dtype=jnp.bfloat16,
                      vmem_limit_bytes=48 * 1024 * 1024):
    B, in_dim = x.shape
    (w1, b1), (w2, b2), (w3, b3), (w4, b4), (w5, b5) = params
    out_dim = w5.shape[1]

    # Effective batch tile: clamp to the (sublane-padded) batch, keep a
    # multiple of 8 sublanes, then zero-pad the batch to a multiple of it.
    tile = min(batch_tile, _round_up(B, 8))
    tile = _round_up(tile, 8)
    B_pad = _round_up(B, tile)
    if B_pad != B:
        x = jnp.pad(x, ((0, B_pad - B), (0, 0)))

    # bf16 operands for the MXU; biases / accumulation / activations stay f32.
    x_c = x.astype(compute_dtype)
    w1c = w1.astype(compute_dtype)
    w2c = w2.astype(compute_dtype)
    w3c = w3.astype(compute_dtype)
    w4c = w4.astype(compute_dtype)
    w5_row = w5.T.astype(compute_dtype)          # (1, h4) row for VPU reduce

    def w_spec(shape):
        # Full weight/bias resident in VMEM for every grid step.
        return pl.BlockSpec(shape, lambda i: (0, 0))

    grid = (B_pad // tile,)
    out = pl.pallas_call(
        mlp_kernel,
        out_shape=jax.ShapeDtypeStruct((B_pad, out_dim), jnp.float32),
        grid_spec=pltpu.PrefetchScalarGridSpec(
            num_scalar_prefetch=0,
            grid=grid,
            in_specs=[
                pl.BlockSpec((tile, in_dim), lambda i: (i, 0)),
                w_spec(w1c.shape), w_spec(b1.shape),
                w_spec(w2c.shape), w_spec(b2.shape),
                w_spec(w3c.shape), w_spec(b3.shape),
                w_spec(w4c.shape), w_spec(b4.shape),
                w_spec(w5_row.shape), w_spec(b5.shape),
            ],
            out_specs=pl.BlockSpec((tile, out_dim), lambda i: (i, 0)),
        ),
        compiler_params=pltpu.CompilerParams(
            dimension_semantics=("parallel",),
            vmem_limit_bytes=vmem_limit_bytes),
    )(x_c, w1c, b1, w2c, b2, w3c, b3, w4c, b4, w5_row, b5)
    return out[:B]


def init_params(key, input_size, h1=128, h2=128, h3=64, h4=64, out=1,
                dtype=jnp.float32):
    """Deterministic init mimicking PyTorch Linear (uniform +- 1/sqrt(fan_in))."""
    dims = [(input_size, h1), (h1, h2), (h2, h3), (h3, h4), (h4, out)]
    params = []
    for (fan_in, fan_out) in dims:
        key, kw, kb = jax.random.split(key, 3)
        bound = 1.0 / (fan_in ** 0.5)
        w = jax.random.uniform(kw, (fan_in, fan_out), dtype, -bound, bound)
        b = jax.random.uniform(kb, (1, fan_out), dtype, -bound, bound)
        params.append((w, b))
    return params


def reference_forward(x, params, compute_dtype=jnp.bfloat16):
    """Pure-JAX reference mirroring the kernel's mixed-precision recipe."""
    (w1, b1), (w2, b2), (w3, b3), (w4, b4), (w5, b5) = params
    cdt = compute_dtype
    h = jnp.dot(x.astype(cdt), w1.astype(cdt), preferred_element_type=jnp.float32)
    h = jnp.maximum(h + b1, 0.0)
    h = jnp.dot(h.astype(cdt), w2.astype(cdt), preferred_element_type=jnp.float32)
    h = jnp.maximum(h + b2, 0.0)
    h = jnp.dot(h.astype(cdt), w3.astype(cdt), preferred_element_type=jnp.float32)
    h = jnp.maximum(h + b3, 0.0)
    h = jnp.dot(h.astype(cdt), w4.astype(cdt), preferred_element_type=jnp.float32)
    h = jnp.maximum(h + b4, 0.0)
    return h @ w5.astype(cdt).astype(jnp.float32) + b5


if __name__ == "__main__":
    key = jax.random.PRNGKey(0)
    k_x, k_p = jax.random.split(key)

    batch, input_size = 16, 32
    x = jax.random.normal(k_x, (batch, input_size), dtype=jnp.float32)
    params = init_params(k_p, input_size)

    out = simple_nn_forward(x, params)
    out = jax.block_until_ready(out)
    ref = reference_forward(x, params)
    assert out.shape == (batch, 1)
    assert jnp.allclose(out, ref, atol=2e-2, rtol=2e-2)

    # Tail-padding path: batch not a multiple of the sublane tile.
    x_odd = x[:13]
    out_odd = jax.block_until_ready(simple_nn_forward(x_odd, params))
    assert out_odd.shape == (13, 1)
    assert jnp.allclose(out_odd, ref[:13], atol=2e-2, rtol=2e-2)

    print("KERNEL_OK")
</pallas_src>

<mosaic_0001>
module attributes {stable_mosaic.version = 11 : i64} {
  func.func @mlp_kernel(%arg0: i32, %arg1: memref<16x32xbf16, #tpu.memory_space<vmem>>, %arg2: memref<32x128xbf16, #tpu.memory_space<vmem>>, %arg3: memref<1x128xf32, #tpu.memory_space<vmem>>, %arg4: memref<128x128xbf16, #tpu.memory_space<vmem>>, %arg5: memref<1x128xf32, #tpu.memory_space<vmem>>, %arg6: memref<128x64xbf16, #tpu.memory_space<vmem>>, %arg7: memref<1x64xf32, #tpu.memory_space<vmem>>, %arg8: memref<64x64xbf16, #tpu.memory_space<vmem>>, %arg9: memref<1x64xf32, #tpu.memory_space<vmem>>, %arg10: memref<1x64xbf16, #tpu.memory_space<vmem>>, %arg11: memref<1x1xf32, #tpu.memory_space<vmem>>, %arg12: memref<16x1xf32, #tpu.memory_space<vmem>>) attributes {dimension_semantics = [#tpu.dimension_semantics<parallel>], iteration_bounds = array<i64: 1>, scalar_prefetch = 0 : i64, scratch_operands = 0 : i64, tpu.core_type = #tpu.core_type<tc>, window_params = [{transform_indices = @transform_0, window_bounds = array<i64: 16, 32>}, {pipeline_mode = #tpu.pipeline_mode<synchronous>, transform_indices = @transform_1, window_bounds = array<i64: 32, 128>}, {pipeline_mode = #tpu.pipeline_mode<synchronous>, transform_indices = @transform_2, window_bounds = array<i64: 1, 128>}, {pipeline_mode = #tpu.pipeline_mode<synchronous>, transform_indices = @transform_3, window_bounds = array<i64: 128, 128>}, {pipeline_mode = #tpu.pipeline_mode<synchronous>, transform_indices = @transform_4, window_bounds = array<i64: 1, 128>}, {pipeline_mode = #tpu.pipeline_mode<synchronous>, transform_indices = @transform_5, window_bounds = array<i64: 128, 64>}, {pipeline_mode = #tpu.pipeline_mode<synchronous>, transform_indices = @transform_6, window_bounds = array<i64: 1, 64>}, {pipeline_mode = #tpu.pipeline_mode<synchronous>, transform_indices = @transform_7, window_bounds = array<i64: 64, 64>}, {pipeline_mode = #tpu.pipeline_mode<synchronous>, transform_indices = @transform_8, window_bounds = array<i64: 1, 64>}, {pipeline_mode = #tpu.pipeline_mode<synchronous>, transform_indices = @transform_9, window_bounds = array<i64: 1, 64>}, {pipeline_mode = #tpu.pipeline_mode<synchronous>, transform_indices = @transform_10, window_bounds = array<i64: 1, 1>}, {transform_indices = @transform_11, window_bounds = array<i64: 16, 1>}]} {
    %c0 = arith.constant 0 : index
    %c0_0 = arith.constant 0 : index
    %0 = vector.load %arg1[%c0, %c0_0] : memref<16x32xbf16, #tpu.memory_space<vmem>>, vector<16x32xbf16>
    %c0_1 = arith.constant 0 : index
    %c0_2 = arith.constant 0 : index
    %1 = vector.load %arg2[%c0_1, %c0_2] : memref<32x128xbf16, #tpu.memory_space<vmem>>, vector<32x128xbf16>
    %cst = arith.constant dense<0.000000e+00> : vector<16x128xf32>
    %2 = tpu.matmul %0, %1, %cst {dimension_numbers = #tpu.dot_dimension_numbers<[1], [0], [0], [1], [0, 0, 1, 1], [], []>} : vector<16x32xbf16>, vector<32x128xbf16>, vector<16x128xf32> -> vector<16x128xf32>
    %c0_3 = arith.constant 0 : index
    %c0_4 = arith.constant 0 : index
    %3 = vector.load %arg3[%c0_3, %c0_4] : memref<1x128xf32, #tpu.memory_space<vmem>>, vector<1x128xf32>
    %4 = vector.broadcast %3 : vector<1x128xf32> to vector<16x128xf32>
    %5 = arith.addf %2, %4 : vector<16x128xf32>
    %cst_5 = arith.constant 0.000000e+00 : f32
    %6 = vector.broadcast %cst_5 : f32 to vector<16x128xf32>
    %7 = arith.maximumf %5, %6 : vector<16x128xf32>
    %8 = arith.truncf %7 : vector<16x128xf32> to vector<16x128xbf16>
    %c0_6 = arith.constant 0 : index
    %c0_7 = arith.constant 0 : index
    %9 = vector.load %arg4[%c0_6, %c0_7] : memref<128x128xbf16, #tpu.memory_space<vmem>>, vector<128x128xbf16>
    %cst_8 = arith.constant dense<0.000000e+00> : vector<16x128xf32>
    %10 = tpu.matmul %8, %9, %cst_8 {dimension_numbers = #tpu.dot_dimension_numbers<[1], [0], [0], [1], [0, 0, 1, 1], [], []>} : vector<16x128xbf16>, vector<128x128xbf16>, vector<16x128xf32> -> vector<16x128xf32>
    %c0_9 = arith.constant 0 : index
    %c0_10 = arith.constant 0 : index
    %11 = vector.load %arg5[%c0_9, %c0_10] : memref<1x128xf32, #tpu.memory_space<vmem>>, vector<1x128xf32>
    %12 = vector.broadcast %11 : vector<1x128xf32> to vector<16x128xf32>
    %13 = arith.addf %10, %12 : vector<16x128xf32>
    %cst_11 = arith.constant 0.000000e+00 : f32
    %14 = vector.broadcast %cst_11 : f32 to vector<16x128xf32>
    %15 = arith.maximumf %13, %14 : vector<16x128xf32>
    %16 = arith.truncf %15 : vector<16x128xf32> to vector<16x128xbf16>
    %c0_12 = arith.constant 0 : index
    %c0_13 = arith.constant 0 : index
    %17 = vector.load %arg6[%c0_12, %c0_13] : memref<128x64xbf16, #tpu.memory_space<vmem>>, vector<128x64xbf16>
    %cst_14 = arith.constant dense<0.000000e+00> : vector<16x64xf32>
    %18 = tpu.matmul %16, %17, %cst_14 {dimension_numbers = #tpu.dot_dimension_numbers<[1], [0], [0], [1], [0, 0, 1, 1], [], []>} : vector<16x128xbf16>, vector<128x64xbf16>, vector<16x64xf32> -> vector<16x64xf32>
    %c0_15 = arith.constant 0 : index
    %c0_16 = arith.constant 0 : index
    %19 = vector.load %arg7[%c0_15, %c0_16] : memref<1x64xf32, #tpu.memory_space<vmem>>, vector<1x64xf32>
    %20 = vector.broadcast %19 : vector<1x64xf32> to vector<16x64xf32>
    %21 = arith.addf %18, %20 : vector<16x64xf32>
    %cst_17 = arith.constant 0.000000e+00 : f32
    %22 = vector.broadcast %cst_17 : f32 to vector<16x64xf32>
    %23 = arith.maximumf %21, %22 : vector<16x64xf32>
    %24 = arith.truncf %23 : vector<16x64xf32> to vector<16x64xbf16>
    %c0_18 = arith.constant 0 : index
    %c0_19 = arith.constant 0 : index
    %25 = vector.load %arg8[%c0_18, %c0_19] : memref<64x64xbf16, #tpu.memory_space<vmem>>, vector<64x64xbf16>
    %cst_20 = arith.constant dense<0.000000e+00> : vector<16x64xf32>
    %26 = tpu.matmul %24, %25, %cst_20 {dimension_numbers = #tpu.dot_dimension_numbers<[1], [0], [0], [1], [0, 0, 1, 1], [], []>} : vector<16x64xbf16>, vector<64x64xbf16>, vector<16x64xf32> -> vector<16x64xf32>
    %c0_21 = arith.constant 0 : index
    %c0_22 = arith.constant 0 : index
    %27 = vector.load %arg9[%c0_21, %c0_22] : memref<1x64xf32, #tpu.memory_space<vmem>>, vector<1x64xf32>
    %28 = vector.broadcast %27 : vector<1x64xf32> to vector<16x64xf32>
    %29 = arith.addf %26, %28 : vector<16x64xf32>
    %cst_23 = arith.constant 0.000000e+00 : f32
    %30 = vector.broadcast %cst_23 : f32 to vector<16x64xf32>
    %31 = arith.maximumf %29, %30 : vector<16x64xf32>
    %c0_24 = arith.constant 0 : index
    %c0_25 = arith.constant 0 : index
    %32 = vector.load %arg10[%c0_24, %c0_25] : memref<1x64xbf16, #tpu.memory_space<vmem>>, vector<1x64xbf16>
    %33 = arith.extf %32 : vector<1x64xbf16> to vector<1x64xf32>
    %34 = vector.broadcast %33 : vector<1x64xf32> to vector<16x64xf32>
    %35 = arith.mulf %31, %34 : vector<16x64xf32>
    %cst_26 = arith.constant dense<0.000000e+00> : vector<16xf32>
    %36 = vector.multi_reduction <add>, %35, %cst_26 [1] : vector<16x64xf32> to vector<16xf32>
    %37 = vector.shape_cast %36 : vector<16xf32> to vector<16x1xf32>
    %c0_27 = arith.constant 0 : index
    %c0_28 = arith.constant 0 : index
    %38 = vector.load %arg11[%c0_27, %c0_28] : memref<1x1xf32, #tpu.memory_space<vmem>>, vector<1x1xf32>
    %39 = vector.broadcast %38 : vector<1x1xf32> to vector<16x1xf32>
    %40 = arith.addf %37, %39 : vector<16x1xf32>
    %c0_29 = arith.constant 0 : index
    %c0_30 = arith.constant 0 : index
    %41 = vector.load %arg12[%c0_29, %c0_30] : memref<16x1xf32, #tpu.memory_space<vmem>>, vector<16x1xf32>
    tpu.vector_store %arg12[%c0_29, %c0_30], %40 {strides = array<i32>} : memref<16x1xf32, #tpu.memory_space<vmem>>, vector<16x1xf32>,
    return
  }
  func.func @transform_0(%arg0: i32) -> (i32, i32) {
    %c0_i32 = arith.constant 0 : i32
    %c0_i32_0 = arith.constant 0 : i32
    return %arg0, %c0_i32 : i32, i32
  }
  func.func @transform_1(%arg0: i32) -> (i32, i32) {
    %c0_i32 = arith.constant 0 : i32
    %c0_i32_0 = arith.constant 0 : i32
    %c0_i32_1 = arith.constant 0 : i32
    return %c0_i32, %c0_i32_0 : i32, i32
  }
  func.func @transform_2(%arg0: i32) -> (i32, i32) {
    %c0_i32 = arith.constant 0 : i32
    %c0_i32_0 = arith.constant 0 : i32
    %c0_i32_1 = arith.constant 0 : i32
    return %c0_i32, %c0_i32_0 : i32, i32
  }
  func.func @transform_3(%arg0: i32) -> (i32, i32) {
    %c0_i32 = arith.constant 0 : i32
    %c0_i32_0 = arith.constant 0 : i32
    %c0_i32_1 = arith.constant 0 : i32
    return %c0_i32, %c0_i32_0 : i32, i32
  }
  func.func @transform_4(%arg0: i32) -> (i32, i32) {
    %c0_i32 = arith.constant 0 : i32
    %c0_i32_0 = arith.constant 0 : i32
    %c0_i32_1 = arith.constant 0 : i32
    return %c0_i32, %c0_i32_0 : i32, i32
  }
  func.func @transform_5(%arg0: i32) -> (i32, i32) {
    %c0_i32 = arith.constant 0 : i32
    %c0_i32_0 = arith.constant 0 : i32
    %c0_i32_1 = arith.constant 0 : i32
    return %c0_i32, %c0_i32_0 : i32, i32
  }
  func.func @transform_6(%arg0: i32) -> (i32, i32) {
    %c0_i32 = arith.constant 0 : i32
    %c0_i32_0 = arith.constant 0 : i32
    %c0_i32_1 = arith.constant 0 : i32
    return %c0_i32, %c0_i32_0 : i32, i32
  }
  func.func @transform_7(%arg0: i32) -> (i32, i32) {
    %c0_i32 = arith.constant 0 : i32
    %c0_i32_0 = arith.constant 0 : i32
    %c0_i32_1 = arith.constant 0 : i32
    return %c0_i32, %c0_i32_0 : i32, i32
  }
  func.func @transform_8(%arg0: i32) -> (i32, i32) {
    %c0_i32 = arith.constant 0 : i32
    %c0_i32_0 = arith.constant 0 : i32
    %c0_i32_1 = arith.constant 0 : i32
    return %c0_i32, %c0_i32_0 : i32, i32
  }
  func.func @transform_9(%arg0: i32) -> (i32, i32) {
    %c0_i32 = arith.constant 0 : i32
    %c0_i32_0 = arith.constant 0 : i32
    %c0_i32_1 = arith.constant 0 : i32
    return %c0_i32, %c0_i32_0 : i32, i32
  }
  func.func @transform_10(%arg0: i32) -> (i32, i32) {
    %c0_i32 = arith.constant 0 : i32
    %c0_i32_0 = arith.constant 0 : i32
    %c0_i32_1 = arith.constant 0 : i32
    return %c0_i32, %c0_i32_0 : i32, i32
  }
  func.func @transform_11(%arg0: i32) -> (i32, i32) {
    %c0_i32 = arith.constant 0 : i32
    %c0_i32_0 = arith.constant 0 : i32
    return %arg0, %c0_i32 : i32, i32
  }
}

</mosaic_0001>

<bundles_post_ra>
// kernel: simple_nn_forward.1
= control target key start
LH: loop header
LB: loop body
LE: loop exit
PB: predicated region body
PF: predicated region fallthrough
CT: control target
= control target key end

     0   :  { %v606_v0 = vmov 0.0   ;;  %vm607_vm0 = vmmov 0   ;;  %vm71_vm1 = vcmask 261120   ;;  %vm388_vm2 = vcmask 523264   ;;  %s794_s1 = inlined_call_operand.vmem [shape: bf16[32,128], index: 1, kind: input, shape index: {}]   ;;  %s795_s3 = inlined_call_operand.vmem [shape: bf16[128,128], index: 3, kind: input, shape index: {}]   ;;  %s796_s0 = inlined_call_operand.vmem [shape: bf16[16,32], index: 0, kind: input, shape index: {}]   ;;  %s797_s5 = inlined_call_operand.vmem [shape: bf16[128,64], index: 5, kind: input, shape index: {}]   ;;  %s798_s2 = inlined_call_operand.vmem [shape: f32[1,128], index: 2, kind: input, shape index: {}]   ;;  %s799_s7 = inlined_call_operand.vmem [shape: bf16[64,64], index: 7, kind: input, shape index: {}]   ;;  %s800_s4 = inlined_call_operand.vmem [shape: f32[1,128], index: 4, kind: input, shape index: {}]   ;;  %s801_s6 = inlined_call_operand.vmem [shape: f32[1,64], index: 6, kind: input, shape index: {}]   ;;  %s802_s10 = inlined_call_operand.<no memory space> [shape: f32[1,1], index: 10, kind: input, shape index: {}]   ;;  %s803_s9 = inlined_call_operand.vmem [shape: bf16[1,64], index: 9, kind: input, shape index: {}]   ;;  %s804_s8 = inlined_call_operand.vmem [shape: f32[1,64], index: 8, kind: input, shape index: {}]   ;;  %s805_s11 = inlined_call_operand.vmem [shape: f32[16,1], index: 11, kind: output, shape index: {}]  }
   0x1   :  { %521 = vmatprep.subr.bf16.mxu0 %v606_v0  ;;  %v583_v1 = vld [vmem:[%s794_s1 + $0x8] sm:$0xff]   ;;  %525 = vmatprep.mubr.msk.bf16.mxu0 %vm607_vm0, %v606_v0  ;;  %v584_v2 = vld [vmem:[%s794_s1] sm:$0xff]   ;;  %v586_v3 = vld [vmem:[%s795_s3 + $0x38] sm:$0xff]   ;;  %v16_v54 = vstv %s802_s10  ;;  %v437_v55 = vlaneseq  ;;  %vm458_vm3 = vcmask 7168  }
   0x2   :  { %529 = vmatprep.subr.bf16.mxu1 %v606_v0  ;;  %545 = vmatprep.mubr.msk.bf16.mxu1 %vm607_vm0, %v606_v0  ;;  %v585_v4 = vld [vmem:[%s796_s0] sm:$0xff]   ;;  %v587_v5 = vld [vmem:[%s795_s3 + $0x30] sm:$0xff]   ;;  %v588_v6 = vld [vmem:[%s795_s3 + $0x28] sm:$0xff]   ;;  %17 = vst [vmem:[#allocation2] sm:$0x1] %v16_v54 }
   0x3   :  { %522 = vmatpush3.bf16.msra.mxu0 %v583_v1  ;;  %530 = vmatpush3.bf16.msra.mxu1 %v586_v3  ;;  %v589_v7 = vld [vmem:[%s795_s3 + $0x20] sm:$0xff]   ;;  %v590_v8 = vld [vmem:[%s795_s3 + $0x18] sm:$0xff]   ;;  %v591_v9 = vld [vmem:[%s795_s3 + $0x10] sm:$0xff]   ;;  %v438_v56 = vshrl.u32 %v437_v55, 7 }
   0x4   :  { %523 = vmatprep.subr.bf16.mxu0 %v606_v0  ;;  %531 = vmatprep.subr.bf16.mxu1 %v606_v0  ;;  %v592_v10 = vld [vmem:[%s795_s3 + $0x8] sm:$0xff]   ;;  %v593_v11 = vld [vmem:[%s795_s3] sm:$0xff]   ;;  %v594_v12 = vld [vmem:[%s797_s5 + $0x38] sm:$0xff]  }
   0x5   :  { %v595_v13 = vld [vmem:[%s797_s5 + $0x30] sm:$0xff]   ;;  %v596_v14 = vld [vmem:[%s797_s5 + $0x28] sm:$0xff]   ;;  %v597_v15 = vld [vmem:[%s797_s5 + $0x20] sm:$0xff]   ;;  %v439_v59 = vsub.s32 0, %v438_v56 }
   0x6   :  { %v598_v16 = vld [vmem:[%s797_s5 + $0x18] sm:$0xff]   ;;  %v465_v17 = vld [vmem:[%s798_s2] ss:$0 sm:$0xff]  ;;  %v599_v27 = vld [vmem:[%s797_s5 + $0x10] sm:$0xff]  }
   0x7   :  { %524 = vmatpush3.bf16.msra.mxu0 %v584_v2  ;;  %532 = vmatpush3.bf16.msra.mxu1 %v587_v5  ;;  %v600_v28 = vld [vmem:[%s797_s5 + $0x8] sm:$0xff]   ;;  %v601_v29 = vld [vmem:[%s797_s5] sm:$0xff]   ;;  %v602_v30 = vld [vmem:[%s799_s7 + $0x18] sm:$0xff]  }
   0x8   :  { %549 = vmatprep.subr.bf16.mxu0 %v606_v0  ;;  %533 = vmatprep.subr.bf16.mxu1 %v606_v0  ;;  %v470_v31 = vld [vmem:[%s800_s4] ss:$0 sm:$0xff]  ;;  %v603_v41 = vld [vmem:[%s799_s7 + $0x10] sm:$0xff]   ;;  %v604_v42 = vld [vmem:[%s799_s7 + $0x8] sm:$0xff]  }
   0x9   :  { %v605_v43 = vld [vmem:[%s799_s7] sm:$0xff]  }
   0xa   :  { %526 = vmatmul.mubr.msk.bf16.vlgmr.msra.gmra.mxu0 %vm71_vm1, %v585_v4  ;;  %v479_v44 = vld [vmem:[%s801_s6] ss:$0 sm:$0xff] }
   0xb   :  { %565 = vmatprep.mubr.msk.bf16.mxu0 %vm607_vm0, %v606_v0  ;;  %534 = vmatpush3.bf16.msra.mxu1 %v588_v6  ;;  %v435_v57 = vld [vmem:[%s803_s9] sm:$0x1] }
   0xc   :  { %535 = vmatprep.subr.bf16.mxu1 %v606_v0  ;;  %550 = vmatpush3.bf16.msra.mxu0 %v594_v12  ;;  %v436_v58 = vunpack.c.l.bf16 %v435_v57  ;;  %v488_v60 = vld [vmem:[%s804_s8] ss:$0 sm:$0xff] }
   0xd   :  { %551 = vmatprep.subr.bf16.mxu0 %v606_v0 }
   0xe   :  { %v440_v63 = vrot.slane %v436_v58, %v439_v59 }
   0xf   :  { %536 = vmatpush3.bf16.msra.mxu1 %v589_v7 }
  0x10   :  { %537 = vmatprep.subr.bf16.mxu1 %v606_v0  ;;  %552 = vmatpush3.bf16.msra.mxu0 %v595_v13 }
  0x11   :  { %553 = vmatprep.subr.bf16.mxu0 %v606_v0 }
  0x13   :  { %538 = vmatpush3.bf16.msra.mxu1 %v590_v8 }
  0x14   :  { %539 = vmatprep.subr.bf16.mxu1 %v606_v0  ;;  %554 = vmatpush3.bf16.msra.mxu0 %v596_v14 }
  0x15   :  { %555 = vmatprep.subr.bf16.mxu0 %v606_v0 }
  0x17   :  { %540 = vmatpush3.bf16.msra.mxu1 %v591_v9 }
  0x18   :  { %541 = vmatprep.subr.bf16.mxu1 %v606_v0  ;;  %556 = vmatpush3.bf16.msra.mxu0 %v597_v15 }
  0x19   :  { %557 = vmatprep.subr.bf16.mxu0 %v606_v0 }
  0x1b   :  { %542 = vmatpush3.bf16.msra.mxu1 %v592_v10  ;;  %v494_v10 = vld [vmem:[#allocation2] ss:$0 sm:$0xff] }
  0x1c   :  { %543 = vmatprep.subr.bf16.mxu1 %v606_v0  ;;  %558 = vmatpush3.bf16.msra.mxu0 %v598_v16 }
  0x1d   :  { %559 = vmatprep.subr.bf16.mxu0 %v606_v0 }
  0x1f   :  { %544 = vmatpush3.bf16.msra.mxu1 %v593_v11 }
  0x20   :  { %569 = vmatprep.subr.bf16.mxu1 %v606_v0  ;;  %560 = vmatpush3.bf16.msra.mxu0 %v599_v27 }
  0x21   :  { %561 = vmatprep.subr.bf16.mxu0 %v606_v0 }
  0x24   :  { %562 = vmatpush3.bf16.msra.mxu0 %v600_v28 }
  0x25   :  { %563 = vmatprep.subr.bf16.mxu0 %v606_v0 }
  0x28   :  { %564 = vmatpush3.bf16.msra.mxu0 %v601_v29 }
  0xca   :  { %v109_v18 = vpop.f32.mrf.mxu0 }
  0xcb   :  { %v110_v20 = vadd.f32 %v465_v17, %v109_v18 }
  0xcc   :  { %v527_v19 = vpop.f32.mrf.mxu0 }
  0xcd   :  { %v116_v24 = vmax.f32 %v110_v20, 0.0 }
  0xce   :  { %v112_v21 = vpop.f32.mrf.mxu0 }
  0xcf   :  { %v113_v22 = vadd.f32 %v465_v17, %v112_v21 }
  0xd0   :  { %v528_v23 = vpop.f32.mrf.mxu0 }
  0xd1   :  { %v117_v25 = vmax.f32 %v113_v22, 0.0 }
  0xd3   :  { %v118_v26 = vpack.c.bf16 %v117_v25, %v116_v24 }
  0xd5   :  { %546 = vmatmul.mubr.bf16.vlgmr.msra.gmra.mxu1 %v118_v26 }
  0xd6   :  { %577 = vmatprep.mubr.msk.bf16.mxu1 %vm607_vm0, %v606_v0  ;;  %570 = vmatpush3.bf16.msra.mxu1 %v602_v30 }
  0xd7   :  { %571 = vmatprep.subr.bf16.mxu1 %v606_v0 }
  0xda   :  { %572 = vmatpush3.bf16.msra.mxu1 %v603_v41 }
  0xdb   :  { %573 = vmatprep.subr.bf16.mxu1 %v606_v0 }
  0xde   :  { %574 = vmatpush3.bf16.msra.mxu1 %v604_v42 }
  0xdf   :  { %575 = vmatprep.subr.bf16.mxu1 %v606_v0 }
  0xe2   :  { %576 = vmatpush3.bf16.msra.mxu1 %v605_v43 }
 0x195   :  { %v224_v32 = vpop.f32.mrf.mxu1 }
 0x196   :  { %v225_v34 = vadd.f32 %v470_v31, %v224_v32 }
 0x197   :  { %v547_v33 = vpop.f32.mrf.mxu1 }
 0x198   :  { %v231_v38 = vmax.f32 %v225_v34, 0.0 }
 0x199   :  { %v227_v35 = vpop.f32.mrf.mxu1 }
 0x19a   :  { %v228_v36 = vadd.f32 %v470_v31, %v227_v35 }
 0x19b   :  { %v548_v37 = vpop.f32.mrf.mxu1 }
 0x19c   :  { %v232_v39 = vmax.f32 %v228_v36, 0.0 }
 0x19e   :  { %v233_v40 = vpack.c.bf16 %v232_v39, %v231_v38 }
 0x1a0   :  { %566 = vmatmul.mubr.bf16.vlgmr.msra.gmra.mxu0 %v233_v40 }
 0x260   :  { %v339_v45 = vpop.f32.mrf.mxu0 }
 0x261   :  { %v340_v47 = vadd.f32 %v479_v44, %v339_v45 }
 0x262   :  { %v567_v46 = vpop.f32.mrf.mxu0 }
 0x263   :  { %v346_v51 = vmax.f32 %v340_v47, 0.0 }
 0x264   :  { %v342_v48 = vpop.f32.mrf.mxu0 }
 0x265   :  { %v343_v49 = vadd.f32 %v479_v44, %v342_v48 }
 0x266   :  { %v568_v50 = vpop.f32.mrf.mxu0 }
 0x267   :  { %v347_v52 = vmax.f32 %v343_v49, 0.0 }
 0x269   :  { %v348_v53 = vpack.c.bf16 %v347_v52, %v346_v51 }
 0x26b   :  { %578 = vmatmul.mubr.msk.bf16.vlgmr.msra.gmra.mxu1 %vm388_vm2, %v348_v53 }
 0x32b   :  { %v426_v61 = vpop.f32.mrf.mxu1 }
 0x32c   :  { %v427_v62 = vadd.f32 %v488_v60, %v426_v61 }
 0x32d   :  { %v579_v0 = vpop.f32.mrf.mxu1 }
 0x32e   :  { %v433_v1 = vmax.f32 %v427_v62, 0.0 }
 0x32f   :  { %v429_v2 = vpop.f32.mrf.mxu1 }
 0x330   :  { %v430_v3 = vadd.f32 %v488_v60, %v429_v2  ;;  %v441_v4 = vmul.f32 %v440_v63, %v433_v1 }
 0x331   :  { %v580_v5 = vpop.f32.mrf.mxu1 }
 0x332   :  { %v434_v6 = vmax.f32 %v430_v3, 0.0  ;;  %v443_v7 = vsel %vm388_vm2, %v441_v4, 0.0 }
 0x333   :  { %444 = vadd.xlane.f32.xlu0 %v443_v7 }
 0x334   :  { %v442_v8 = vmul.f32 %v440_v63, %v434_v6 }
 0x336   :  { %v446_v9 = vsel %vm388_vm2, %v442_v8, 0.0 }
 0x337   :  { %447 = vadd.xlane.f32.xlu0 %v446_v9 }
 0x3bc   :  { %v445_v11 = vpop.xlane.xlu0 %444 }
 0x3bd   :  { %v456_v12 = vadd.f32 %v494_v10, %v445_v11 }
 0x3bf   :  { %459 = vst.msk [vmem:[%s805_s11] sm:$0xff] %vm458_vm3, %v456_v12 }
 0x3c0   :  { %v448_v13 = vpop.xlane.xlu0 %447 }
 0x3c1   :  { %v457_v14 = vadd.f32 %v494_v10, %v448_v13 }
 0x3c3   :  { %460 = vst.msk [vmem:[%s805_s11 + $0x8] sm:$0xff] %vm458_vm3, %v457_v14 }

</bundles_post_ra>
